<compile_context>
chip_gen: v7x
topology: tpu7x:2x2x1
jax: 0.10.0
libtpu: 0.0.40
codegen_flags: <defaults>
</compile_context>

<pallas_src>
import functools

import jax
import jax.numpy as jnp
from jax.experimental import pallas as pl
from jax.experimental.pallas import tpu as pltpu


def _se_kernel(x_ref, w1_ref, b1_ref, w2_ref, b2_ref, o_ref, *, inv_hw):
    # x_ref : (NB, Cp, HWp) native dtype (spatial/channel padding is zeros)
    # w1_ref: (Cp, Fp) f32    b1_ref: (1, Fp) f32
    # w2_ref: (Fp, Cp) f32    b2_ref: (1, Cp) f32
    x = x_ref[...]

    # --- squeeze: per-image / per-channel mean over spatial dims.
    #     f32 accumulation; padded lanes are zero so dividing by the true HW
    #     (inv_hw) gives the exact mean. No full-tile f32 copy kept live. ---
    mean = jnp.sum(x, axis=-1, dtype=jnp.float32) * inv_hw            # (NB, Cp)

    # --- fc1 (1x1 conv == matmul, batched over NB images) + ReLU ---
    h = jnp.dot(mean, w1_ref[...], preferred_element_type=jnp.float32)
    h = jnp.maximum(h + b1_ref[...], 0.0)                             # (NB, Fp)

    # --- fc2 + hardsigmoid ---
    s = jnp.dot(h, w2_ref[...], preferred_element_type=jnp.float32) + b2_ref[...]
    scale = jnp.clip(s * (1.0 / 6.0) + 0.5, 0.0, 1.0)                 # (NB, Cp)

    # --- excite: broadcast multiply in the native dtype (scale over HW) ---
    o_ref[...] = x * scale.astype(x.dtype)[:, :, None]


def _round_up(a, m):
    return pl.cdiv(a, m) * m


def _pick_images_per_block(n, per_image_bytes, target_bytes=2 * 1024 * 1024):
    """~2 MB blocks; keep >= 2 grid steps so 'parallel' can split across 2 TCs."""
    nb = max(1, min(n, target_bytes // max(per_image_bytes, 1)))
    if n >= 2:
        nb = min(nb, pl.cdiv(n, 2))
    return int(nb)


def squeeze_excitation(x_nchw, w_fc1, b_fc1, w_fc2, b_fc2):
    """x_nchw: (N,C,H,W); w_fc1: (F,C); b_fc1: (F,); w_fc2: (C,F); b_fc2: (C,)."""
    N, C, H, W = x_nchw.shape
    F = w_fc1.shape[0]
    HW = H * W
    dtype = x_nchw.dtype

    # Lane-dense / sublane-aligned padding.
    HWp = _round_up(HW, 128)
    Cp = _round_up(C, 8)
    Fp = _round_up(F, 8)

    per_image_bytes = Cp * HWp * jnp.dtype(dtype).itemsize
    nb = _pick_images_per_block(N, per_image_bytes)
    Np = _round_up(N, nb)

    # Zero-padded (N, C, HW) activation view; padded rows/lanes are harmless
    # (mean uses true HW, padded outputs are sliced away).
    x = x_nchw.reshape(N, C, HW)
    x = jnp.pad(x, ((0, Np - N), (0, Cp - C), (0, HWp - HW)))

    # Pre-transposed, zero-padded FC weights; lane-dense biases.
    w1_t = jnp.pad(w_fc1.astype(jnp.float32).T, ((0, Cp - C), (0, Fp - F)))  # (Cp, Fp)
    b1 = jnp.pad(b_fc1.astype(jnp.float32), (0, Fp - F)).reshape(1, Fp)
    w2_t = jnp.pad(w_fc2.astype(jnp.float32).T, ((0, Fp - F), (0, Cp - C)))  # (Fp, Cp)
    b2 = jnp.pad(b_fc2.astype(jnp.float32), (0, Cp - C)).reshape(1, Cp)

    kernel = functools.partial(_se_kernel, inv_hw=1.0 / HW)

    out = pl.pallas_call(
        kernel,
        out_shape=jax.ShapeDtypeStruct((Np, Cp, HWp), dtype),
        grid_spec=pltpu.PrefetchScalarGridSpec(
            num_scalar_prefetch=0,
            grid=(Np // nb,),
            in_specs=[
                pl.BlockSpec((nb, Cp, HWp), lambda i: (i, 0, 0)),  # NB images/step
                pl.BlockSpec((Cp, Fp), lambda i: (0, 0)),          # fc1 weight (T)
                pl.BlockSpec((1, Fp), lambda i: (0, 0)),           # fc1 bias
                pl.BlockSpec((Fp, Cp), lambda i: (0, 0)),          # fc2 weight (T)
                pl.BlockSpec((1, Cp), lambda i: (0, 0)),           # fc2 bias
            ],
            out_specs=pl.BlockSpec((nb, Cp, HWp), lambda i: (i, 0, 0)),
        ),
        compiler_params=pltpu.CompilerParams(
            dimension_semantics=("parallel",)),
    )(x, w1_t, b1, w2_t, b2)

    return out[:N, :C, :HW].reshape(N, C, H, W)


def _reference(x, w1, b1, w2, b2):
    mean = jnp.mean(x, axis=(2, 3), keepdims=True)                      # (N,C,1,1)
    h = jnp.einsum("fc,ncij->nfij", w1, mean) + b1[None, :, None, None]
    h = jnp.maximum(h, 0.0)
    s = jnp.einsum("cf,nfij->ncij", w2, h) + b2[None, :, None, None]
    scale = jnp.clip(s / 6.0 + 0.5, 0.0, 1.0)
    return x * scale


if __name__ == "__main__":
    key = jax.random.PRNGKey(0)
    N, C, Fc, H, W = 2, 4, 8, 16, 16   # in_channels=4, fc_channels=8

    k_x, k_w1, k_b1, k_w2, k_b2 = jax.random.split(key, 5)
    x = jax.random.normal(k_x, (N, C, H, W), dtype=jnp.float32)
    # Conv2d 1x1 weights (out, in, 1, 1) flattened to (out, in)
    w_fc1 = jax.random.normal(k_w1, (Fc, C), dtype=jnp.float32) * 0.1
    b_fc1 = jax.random.normal(k_b1, (Fc,), dtype=jnp.float32) * 0.1
    w_fc2 = jax.random.normal(k_w2, (C, Fc), dtype=jnp.float32) * 0.1
    b_fc2 = jax.random.normal(k_b2, (C,), dtype=jnp.float32) * 0.1

    out = squeeze_excitation(x, w_fc1, b_fc1, w_fc2, b_fc2)
    out = jax.block_until_ready(out)

    ref = _reference(x, w_fc1, b_fc1, w_fc2, b_fc2)
    assert out.shape == (N, C, H, W)
    assert jnp.allclose(out, ref, atol=1e-5, rtol=1e-5), "mismatch vs reference"

    print("KERNEL_OK")
</pallas_src>

<mosaic_0001>
module attributes {stable_mosaic.version = 11 : i64} {
  func.func @_se_kernel(%arg0: i32, %arg1: memref<1x8x256xf32, #tpu.memory_space<vmem>>, %arg2: memref<8x8xf32, #tpu.memory_space<vmem>>, %arg3: memref<1x8xf32, #tpu.memory_space<vmem>>, %arg4: memref<8x8xf32, #tpu.memory_space<vmem>>, %arg5: memref<1x8xf32, #tpu.memory_space<vmem>>, %arg6: memref<1x8x256xf32, #tpu.memory_space<vmem>>) attributes {dimension_semantics = [#tpu.dimension_semantics<parallel>], iteration_bounds = array<i64: 2>, scalar_prefetch = 0 : i64, scratch_operands = 0 : i64, tpu.core_type = #tpu.core_type<tc>, window_params = [{transform_indices = @transform_0, window_bounds = array<i64: 1, 8, 256>}, {pipeline_mode = #tpu.pipeline_mode<synchronous>, transform_indices = @transform_1, window_bounds = array<i64: 8, 8>}, {pipeline_mode = #tpu.pipeline_mode<synchronous>, transform_indices = @transform_2, window_bounds = array<i64: 1, 8>}, {pipeline_mode = #tpu.pipeline_mode<synchronous>, transform_indices = @transform_3, window_bounds = array<i64: 8, 8>}, {pipeline_mode = #tpu.pipeline_mode<synchronous>, transform_indices = @transform_4, window_bounds = array<i64: 1, 8>}, {transform_indices = @transform_5, window_bounds = array<i64: 1, 8, 256>}]} {
    %c0 = arith.constant 0 : index
    %c0_0 = arith.constant 0 : index
    %c0_1 = arith.constant 0 : index
    %0 = vector.load %arg1[%c0, %c0_0, %c0_1] : memref<1x8x256xf32, #tpu.memory_space<vmem>>, vector<1x8x256xf32>
    %cst = arith.constant dense<0.000000e+00> : vector<1x8xf32>
    %1 = vector.multi_reduction <add>, %0, %cst [2] : vector<1x8x256xf32> to vector<1x8xf32>
    %cst_2 = arith.constant 3.906250e-03 : f32
    %2 = vector.broadcast %cst_2 : f32 to vector<1x8xf32>
    %3 = arith.mulf %1, %2 : vector<1x8xf32>
    %c0_3 = arith.constant 0 : index
    %c0_4 = arith.constant 0 : index
    %4 = vector.load %arg2[%c0_3, %c0_4] : memref<8x8xf32, #tpu.memory_space<vmem>>, vector<8x8xf32>
    %cst_5 = arith.constant dense<0.000000e+00> : vector<1x8xf32>
    %5 = tpu.matmul %3, %4, %cst_5 {dimension_numbers = #tpu.dot_dimension_numbers<[1], [0], [0], [1], [0, 0, 1, 1], [], []>} : vector<1x8xf32>, vector<8x8xf32>, vector<1x8xf32> -> vector<1x8xf32>
    %c0_6 = arith.constant 0 : index
    %c0_7 = arith.constant 0 : index
    %6 = vector.load %arg3[%c0_6, %c0_7] : memref<1x8xf32, #tpu.memory_space<vmem>>, vector<1x8xf32>
    %7 = arith.addf %5, %6 : vector<1x8xf32>
    %cst_8 = arith.constant 0.000000e+00 : f32
    %8 = vector.broadcast %cst_8 : f32 to vector<1x8xf32>
    %9 = arith.maximumf %7, %8 : vector<1x8xf32>
    %c0_9 = arith.constant 0 : index
    %c0_10 = arith.constant 0 : index
    %10 = vector.load %arg4[%c0_9, %c0_10] : memref<8x8xf32, #tpu.memory_space<vmem>>, vector<8x8xf32>
    %cst_11 = arith.constant dense<0.000000e+00> : vector<1x8xf32>
    %11 = tpu.matmul %9, %10, %cst_11 {dimension_numbers = #tpu.dot_dimension_numbers<[1], [0], [0], [1], [0, 0, 1, 1], [], []>} : vector<1x8xf32>, vector<8x8xf32>, vector<1x8xf32> -> vector<1x8xf32>
    %c0_12 = arith.constant 0 : index
    %c0_13 = arith.constant 0 : index
    %12 = vector.load %arg5[%c0_12, %c0_13] : memref<1x8xf32, #tpu.memory_space<vmem>>, vector<1x8xf32>
    %13 = arith.addf %11, %12 : vector<1x8xf32>
    %cst_14 = arith.constant 0.166666672 : f32
    %14 = vector.broadcast %cst_14 : f32 to vector<1x8xf32>
    %15 = arith.mulf %13, %14 : vector<1x8xf32>
    %cst_15 = arith.constant 5.000000e-01 : f32
    %16 = vector.broadcast %cst_15 : f32 to vector<1x8xf32>
    %17 = arith.addf %15, %16 : vector<1x8xf32>
    %cst_16 = arith.constant 0.000000e+00 : f32
    %cst_17 = arith.constant 1.000000e+00 : f32
    %18 = vector.broadcast %cst_16 : f32 to vector<1x8xf32>
    %19 = arith.maximumf %18, %17 : vector<1x8xf32>
    %20 = vector.broadcast %cst_17 : f32 to vector<1x8xf32>
    %21 = arith.minimumf %20, %19 : vector<1x8xf32>
    %22 = vector.shape_cast %21 : vector<1x8xf32> to vector<1x8x1xf32>
    %23 = vector.broadcast %22 : vector<1x8x1xf32> to vector<1x8x256xf32>
    %24 = arith.mulf %0, %23 : vector<1x8x256xf32>
    %c0_18 = arith.constant 0 : index
    %c0_19 = arith.constant 0 : index
    %c0_20 = arith.constant 0 : index
    %25 = vector.load %arg6[%c0_18, %c0_19, %c0_20] : memref<1x8x256xf32, #tpu.memory_space<vmem>>, vector<1x8x256xf32>
    tpu.vector_store %arg6[%c0_18, %c0_19, %c0_20], %24 {strides = array<i32>} : memref<1x8x256xf32, #tpu.memory_space<vmem>>, vector<1x8x256xf32>,
    return
  }
  func.func @transform_0(%arg0: i32) -> (i32, i32, i32) {
    %c0_i32 = arith.constant 0 : i32
    %c0_i32_0 = arith.constant 0 : i32
    %c0_i32_1 = arith.constant 0 : i32
    return %arg0, %c0_i32, %c0_i32_0 : i32, i32, i32
  }
  func.func @transform_1(%arg0: i32) -> (i32, i32) {
    %c0_i32 = arith.constant 0 : i32
    %c0_i32_0 = arith.constant 0 : i32
    %c0_i32_1 = arith.constant 0 : i32
    return %c0_i32, %c0_i32_0 : i32, i32
  }
  func.func @transform_2(%arg0: i32) -> (i32, i32) {
    %c0_i32 = arith.constant 0 : i32
    %c0_i32_0 = arith.constant 0 : i32
    %c0_i32_1 = arith.constant 0 : i32
    return %c0_i32, %c0_i32_0 : i32, i32
  }
  func.func @transform_3(%arg0: i32) -> (i32, i32) {
    %c0_i32 = arith.constant 0 : i32
    %c0_i32_0 = arith.constant 0 : i32
    %c0_i32_1 = arith.constant 0 : i32
    return %c0_i32, %c0_i32_0 : i32, i32
  }
  func.func @transform_4(%arg0: i32) -> (i32, i32) {
    %c0_i32 = arith.constant 0 : i32
    %c0_i32_0 = arith.constant 0 : i32
    %c0_i32_1 = arith.constant 0 : i32
    return %c0_i32, %c0_i32_0 : i32, i32
  }
  func.func @transform_5(%arg0: i32) -> (i32, i32, i32) {
    %c0_i32 = arith.constant 0 : i32
    %c0_i32_0 = arith.constant 0 : i32
    %c0_i32_1 = arith.constant 0 : i32
    return %arg0, %c0_i32, %c0_i32_0 : i32, i32, i32
  }
}

</mosaic_0001>

<bundles_post_ra>
// kernel: tpu_custom_call.1
= control target key start
LH: loop header
LB: loop body
LE: loop exit
PB: predicated region body
PF: predicated region fallthrough
CT: control target
= control target key end

     0   :  { %10 = vsyncpa [#allocation3], 0  ;;  %s1000_s0 = inlined_call_operand.hbm [shape: f32[2,8,256], index: 0, kind: input, shape index: {}]   ;;  %s1001_s1 = inlined_call_operand.hbm [shape: f32[8,8], index: 1, kind: input, shape index: {}]   ;;  %s1002_s2 = inlined_call_operand.vmem [shape: f32[1,8], index: 2, kind: input, shape index: {}]   ;;  %s1003_s3 = inlined_call_operand.vmem [shape: f32[8,8], index: 3, kind: input, shape index: {}]   ;;  %s1004_s4 = inlined_call_operand.vmem [shape: f32[1,8], index: 4, kind: input, shape index: {}]   ;;  %s1005_s5 = inlined_call_operand.hbm [shape: f32[2,8,256], index: 5, kind: output, shape index: {}]  }
   0x1   :  { %12 = vsyncpa [#allocation3 + $0x1], 0 }
   0x2   :  { %13 = vsyncpa [#allocation6], 0 }
   0x3   :  { %14 = vsyncpa [#allocation4], 0 }
   0x4   :  { %16 = vsyncpa [#allocation4 + $0x1], 0  ;;  %s786_s18 = smov 0   ;;  %s788_s19 = smov 0  }
   0x5   :  { %s790_s20 = smov 0   ;;  %s792_s21 = smov 0  }
   0x6 LB: > { %s807_s22 = sadd.s32 4294967295, %s749_s21   ;;  %s528_s23 = sadd.s32 4294967294, %s749_s21   ;;  %s749_s21 = sphi %s792_s21, %s1029_s21   ;;  %s745_s20 = sphi %s790_s20, %s1028_s20   ;;  %s741_s19 = sphi %s788_s19, %s1027_s19   ;;  %s737_s18 = sphi %s786_s18, %s1026_s18  }
   0x7   : > { %p42_p0 = scmp.ne.s32.totalorder %s741_s19, %s737_s18  ;;  %p1006_p1 = scmp.eq.s32.totalorder %s807_s22, 0 }
   0x8   : > { %p156_p3 = scmp.eq.s32.totalorder %s528_s23, 1  ;;  %p529_p5 = scmp.ge.s32.totalorder %s749_s21, 1 }
   0x9   : > { %p816_p4 = por %p1006_p1, %p42_p0  ;;  %p163_p7 = scmp.lt.s32.totalorder %s749_s21, 3 }
   0xa   : > { %p821_p6 = por %p156_p3, %p42_p0  ;;  %s751_s27 = smov [#allocation5]  }
   0xb   : > { %s1009_s24 = scalar_select %p816_p4, 1, 0 }
   0xc   : > { %s1010_s25 = scalar_select %p821_p6, 1, 0 }
   0xd   : > { %p826_p8 = pnand %p529_p5, %p163_p7  ;;  %s176_s28 = sshll.u32 %s751_s27, 4  ;;  %s177_s28 = int_to_ptr.vmem [resolvable:$true] %s176_s28 }
   0xe   : > { %s834_s29 = sadd.s32 1, %s749_s21   ;;  %s29_s8 = sadd.s32 1, %s745_s20 }
   0xf   : > { %s1011_s26 = scalar_select %p826_p8, 1, 0 }
  0x10   : > { %p570_p10 = pneg %p826_p8  ;;  %s26_s6 = ssub.s32 %s749_s21, %s834_s29 }
  0x11   : > { %p844_p12 = scmp.eq.s32.totalorder %s26_s6, 0  ;;  %s621_s11 = scalar_lea.hbm %s1001_s1, 128 }
  0x12   : > { %p838_p11 = pnand %p570_p10, %p1006_p1  ;;  %p622_p0 = scmp.ne.s32.totalorder %s1001_s1, %s621_s11 }
  0x13   : > { %s1013_s7 = scalar_select %p844_p12, 1, 0 }
  0x14   : > { %p623_p3 = pneg %p838_p11  ;;  %p628_p10 = scmp.lt.u32.totalorder %s621_s11, %s1001_s1 }
  0x16   : > { %p624_p5 = pnand %p623_p3, %p622_p0 }
  0x18   : > { %p625_p7 = pneg %p624_p5 }
  0x1a   : > { %p630_p9 = pnand %p628_p10, %p625_p7 }
  0x1c   : > { %633 = shalt.err (!%p630_p9)
}
  0x1d   : > { %s634_s16 = scalar_lea.vmem %s177_s28, 128  ;;  %p642_p6 = scmp.lt.s32.totalorder %s177_s28, %s177_s28 }
  0x1e   : > { %p635_p1 = scmp.ne.s32.totalorder %s177_s28, %s634_s16  ;;  %p643_p4 = scmp.lt.s32.totalorder %s634_s16, %s634_s16 }
  0x20   : > { %p637_p2 = pnand %p635_p1, %p623_p3  ;;  %p644_p8 = por %p643_p4, %p642_p6 }
  0x22   : > { %p638_p13 = pneg %p637_p2 }
  0x24   : > { %p645_p12 = pnand %p644_p8, %p638_p13 }
  0x26   : > { %648 = shalt.err (!%p645_p12)
}
  0x27   : > { %573 = dma.hbm_to_vmem [thread:$0]  (!%p838_p11), %s1001_s1, 128, %s177_s28, [#allocation6]  }
  0x28   : > { %p1014_p1 = scmp.ne.s32.totalorder %s1013_s7, 0  ;;  %p37_p2 = scmp.eq.s32.totalorder %s749_s21, 0 }
  0x29   : > { %p1015_p4 = scmp.ne.s32.totalorder %s745_s20, %s741_s19  ;;  %p1016_p6 = scmp.eq.s32.totalorder %s807_s22, 1 }
  0x2a   : > { %s870_s27 = scalar_select %p1014_p1, %s745_s20, %s29_s8  }
  0x2b   : > { %p878_p8 = por %p1016_p6, %p1015_p4  ;;  %p583_p9 = scmp.lt.s32.totalorder %s749_s21, 2 }
  0x2c   : > { %s196_s6 = sand.u32 1, %s745_s20   ;;  %p1018_p12 = pmov %p1015_p4 }
  0x2d   : > { %s532_s9 = sshll.u32 %s196_s6, 4  ;;  %s546_s10 = sshll.u32 %s749_s21, 8 }
  0x2e   : > { %p38_p13 = por %p37_p2, %p1018_p12  ;;  %s891_s28 = scalar_lea.hbm %s1000_s0, %s546_s10 }
  0x2f   : > { %s200_s7 = scalar_lea.vmem [#allocation2], %s532_s9  ;;  %s197_s14 = scalar_lea.sflag [#allocation3], %s196_s6 }
  0x30   : > { %s208_s8 = sshll.u32 %s200_s7, 4  ;;  %p893_p11 = pnand %p583_p9, %p38_p13  ;;  %s897_s8 = int_to_ptr.vmem [resolvable:$true] %s208_s8 }
  0x31   : > { %s649_s15 = scalar_lea.hbm %s891_s28, 256  ;;  %s654_s23 = scalar_lea.hbm %s1000_s0, 512 }
  0x32   : > { %p650_p0 = scmp.ne.s32.totalorder %s891_s28, %s649_s15  ;;  %p651_p3 = pneg %p893_p11 }
  0x33   : > { %p655_p10 = scmp.lt.u32.totalorder %s891_s28, %s1000_s0  ;;  %p656_p1 = scmp.lt.u32.totalorder %s654_s23, %s649_s15 }
  0x34   : > { %p652_p5 = pnand %p651_p3, %p650_p0  ;;  %p658_p4 = scmp.lt.u32.totalorder %s649_s15, %s891_s28 }
  0x35   : > { %p657_p2 = por %p656_p1, %p655_p10 }
  0x36   : > { %p653_p7 = pneg %p652_p5 }
  0x37   : > { %p659_p6 = por %p658_p4, %p657_p2 }
  0x39   : > { %p660_p9 = pnand %p659_p6, %p653_p7 }
  0x3b   : > { %663 = shalt.err (!%p660_p9)
}
  0x3c   : > { %s664_s6 = scalar_lea.vmem %s897_s8, 256  ;;  %s752_s11 = smov [#allocation2]  }
  0x3d   : > { %p665_p12 = scmp.ne.s32.totalorder %s897_s8, %s664_s6  ;;  %s669_s12 = sshll.u32 %s752_s11, 4  ;;  %s670_s12 = int_to_ptr.vmem [resolvable:$false] %s669_s12 }
  0x3e   : > { %s671_s7 = scalar_lea.vmem %s670_s12, 512  ;;  %p672_p5 = scmp.lt.s32.totalorder %s897_s8, %s670_s12 }
  0x3f   : > { %p667_p13 = pnand %p665_p12, %p651_p3  ;;  %p673_p10 = scmp.lt.s32.totalorder %s671_s7, %s664_s6 }
  0x41   : > { %p668_p0 = pneg %p667_p13  ;;  %p674_p1 = por %p673_p10, %p672_p5 }
  0x43   : > { %p675_p2 = pnand %p674_p1, %p668_p0 }
  0x45   : > { %678 = shalt.err (!%p675_p2)
}
  0x46   : > { %577 = dma.hbm_to_vmem [thread:$0]  (!%p893_p11), %s891_s28, 256, %s897_s8, %s197_s14  }
  0x47   : > { %p1020_p7 = scmp.ne.s32.totalorder %s1011_s26, 0 }
  0x48   : > { %s927_s15 = sand.u32 (!%p1020_p7), 1, %s741_s19   ;;  %p1021_p3 = scmp.ne.s32.totalorder (!%p1020_p7), %s1009_s24, 0 }
  0x49   : > { %217 = sbr.rel (%p1020_p7) target bundleno = 804 (0x324), region = 40  ;;  %s536_s16 = sshll.u32 (!%p1020_p7), %s927_s15, 4 }
  0x4a   : > { %s220_s17 = scalar_lea.sflag (!%p1020_p7), [#allocation3], %s927_s15  ;;  %s223_s23 = scalar_lea.vmem (!%p1020_p7), [#allocation2], %s536_s16 }
  0x50   : > { %724 = dma.done.wait (%p1021_p3), %s220_s17, 256  }
  0x51   : > { %726 = vsyncadd (%p1021_p3), %s220_s17, 4294967040  ;;  %p1022_p11 = scmp.eq.s32.totalorder %s807_s22, 0 }
  0x53   : > { %728 = dma.done.wait (%p1022_p11), [#allocation6], 128   ;;  %p1023_p4 = pmov %p1022_p11 }
  0x54   : > { %v254_v0 = vld [vmem:[%s223_s23] sm:$0xff]  ;;  %v255_v1 = vld [vmem:[%s223_s23 + $0x8] sm:$0xff]  ;;  %v753_v3 = vmov 0.0   ;;  %vm754_vm0 = vmmov 0   ;;  %v263_v5 = vlaneseq  ;;  %vm269_vm1 = vcmask 64512   ;;  %s547_s9 = sshll.u32 %s807_s22, 8 }
  0x55   : > { %730 = vsyncadd (%p1023_p4), [#allocation6], 4294967168  ;;  %v256_v2 = vadd.f32 %v255_v1, %v254_v0  ;;  %552 = vmatprep.subr.mxu0 %v753_v3  ;;  %v260_v4 = vld [vmem:[#allocation5] sm:$0xff]  ;;  %557 = vmatprep.subr.mxu1 %v753_v3  ;;  %s253_s10 = scalar_lea.vmem [#allocation7], %s536_s16  ;;  %s956_s7 = scalar_lea.hbm %s1005_s5, %s547_s9 }
  0x56   : > { %553 = vmatpush3.msra.mxu0 %v260_v4  ;;  %554 = vmatprep.mubr.msk.f32.mxu0 %vm754_vm0, %v753_v3  ;;  %v264_v6 = vand.u32 127, %v263_v5  ;;  %v266_v7 = vshrl.u32 %v263_v5, 7  ;;  %v343_v12 = vld [vmem:[%s1003_s3] sm:$0xff]  ;;  %s448_s6 = sshll.u32 %s253_s10, 4  ;;  %s434_s17 = scalar_lea.sflag [#allocation4], %s927_s15  ;;  %s958_s6 = int_to_ptr.vmem [resolvable:$true] %s448_s6 }
  0x57   : > { %257 = vadd.xlane.f32.xlu0 %v256_v2  ;;  %559 = vmatprep.mubr.msk.f32.mxu1 %vm754_vm0, %v753_v3  ;;  %v261_v13 = vld [vmem:[%s1002_s2] sm:$0x1]  ;;  %s679_s22 = scalar_lea.vmem %s958_s6, 256  ;;  %s755_s16 = smov [#allocation7]  }
  0x58   : > { %v267_v8 = vsub.s32 %v264_v6, %v266_v7  ;;  %558 = vmatpush3.msra.mxu1 %v343_v12  ;;  %v344_v18 = vld [vmem:[%s1004_s4] sm:$0x1]  ;;  %v424_v25 = vsub.s32 0, %v266_v7  ;;  %p680_p6 = scmp.ne.s32.totalorder %s958_s6, %s679_s22  ;;  %s683_s23 = sshll.u32 %s755_s16, 4  ;;  %s684_s23 = int_to_ptr.vmem [resolvable:$false] %s683_s23 }
  0x59   : > { %s685_s24 = scalar_lea.vmem %s684_s23, 512  ;;  %p686_p13 = scmp.lt.s32.totalorder %s958_s6, %s684_s23 }
  0x5a   : > { %p681_p9 = pnand %p680_p6, %p878_p8  ;;  %p687_p0 = scmp.lt.s32.totalorder %s685_s24, %s679_s22 }
  0x5c   : > { %p682_p12 = pneg %p681_p9  ;;  %p688_p5 = por %p687_p0, %p686_p13 }
  0x5e   : > { %p689_p10 = pnand %p688_p5, %p682_p12 }
  0xe4   : > { %v258_v9 = vpop.xlane.xlu0 %257 }
  0xe5   : > { %v259_v10 = vmul.f32 0.00390625, %v258_v9 }
  0xe7   : > { %v268_v11 = vrot.slane %v259_v10, %v267_v8 }
  0xe9   : > { %555 = vmatmul.mubr.msk.f32.vlgmr.msra.gmra.mrb[0].mxu0 %vm269_vm1, %v268_v11 }
 0x1bc   : > { %v338_v14 = vpop.f32.mrb[0].mxu0 }
 0x1bd   : > { %v339_v15 = vadd.f32 %v338_v14, %v261_v13  ;;  %v556_v16 = vpop.f32.mrb[1].mxu0 }
 0x1bf   : > { %v342_v17 = vmax.f32 %v339_v15, 0.0 }
 0x1c1   : > { %560 = vmatmul.mubr.msk.f32.vlgmr.msra.gmra.mrb[0].mxu1 %vm269_vm1, %v342_v17 }
 0x294   : > { %v414_v19 = vpop.f32.mrb[0].mxu1 }
 0x295   : > { %v415_v20 = vadd.f32 %v414_v19, %v344_v18  ;;  %v561_v21 = vpop.f32.mrb[1].mxu1 }
 0x297   : > { %v418_v22 = vmul.f32 0.16666667, %v415_v20 }
 0x299   : > { %v419_v23 = vadd.f32 0.5, %v418_v22 }
 0x29b   : > { %v420_v24 = vmax.f32 %v419_v23, 0.0 }
 0x29d   : > { %v421_v26 = vmin.f32 %v420_v24, 1.0 }
 0x29f   : > { %v425_v27 = vrot.slane %v421_v26, %v424_v25 }
 0x2a1   : > { %427 = vbcast.lane.b32.xlu0 %v425_v27, 256 }
 0x313   : > { %v428_v28 = vpop.permute.xlu0 %427 }
 0x314   : > { %v429_v29 = vmul.f32 %v428_v28, %v254_v0  ;;  %v430_v30 = vmul.f32 %v428_v28, %v255_v1 }
 0x316   : > { %431 = vst [vmem:[%s253_s10] sm:$0xff] %v429_v29  ;;  %432 = vst [vmem:[%s253_s10 + $0x8] sm:$0xff] %v430_v30 }
 0x317   : > { %692 = shalt.err (!%p689_p10)
}
 0x318   : > { %s693_s15 = scalar_lea.hbm %s956_s7, 256  ;;  %s697_s8 = scalar_lea.hbm %s1005_s5, 512 }
 0x319   : > { %p694_p1 = scmp.ne.s32.totalorder %s956_s7, %s693_s15  ;;  %p698_p3 = scmp.lt.u32.totalorder %s956_s7, %s1005_s5 }
 0x31a   : > { %p699_p11 = scmp.lt.u32.totalorder %s697_s8, %s693_s15  ;;  %p701_p6 = scmp.lt.u32.totalorder %s693_s15, %s956_s7 }
 0x31b   : > { %p695_p2 = pnand %p694_p1, %p878_p8 }
 0x31c   : > { %p700_p4 = por %p699_p11, %p698_p3 }
 0x31d   : > { %p696_p7 = pneg %p695_p2 }
 0x31e   : > { %p702_p9 = por %p701_p6, %p700_p4 }
 0x320   : > { %p703_p12 = pnand %p702_p9, %p696_p7 }
 0x322   : > { %706 = shalt.err (!%p703_p12)
}
 0x323   : > { %568 = dma.vmem_to_hbm [thread:$0]  (%p878_p8), %s958_s6, 256, %s956_s7, %s434_s17  }
 0x324 PF: > { %s460_s9 = sand.u32 1, %s737_s18   ;;  %p1024_p13 = scmp.ne.s32.totalorder %s1010_s25, 0 }
 0x325   : > { %p1025_p0 = scmp.ge.s32.totalorder %s749_s21, 2  ;;  %s461_s10 = scalar_lea.sflag [#allocation4], %s460_s9 }
 0x327   : > { %p579_p5 = pnand %p1025_p0, %p1024_p13 }
 0x329   : > { %732 = dma.done.wait (!%p579_p5), %s461_s10, 256  }
 0x32a   : > { %734 = vsyncadd (!%p579_p5), %s461_s10, 4294967040  ;;  %p19_p10 = scmp.ge.s32.totalorder %s834_s29, 4   ;;  %s1026_s18 = smov %s741_s19 }
 0x32b   : > { %s1027_s19 = smov %s745_s20  ;;  %s1028_s20 = smov %s870_s27 }
 0x32c   : > { %s1029_s21 = smov %s834_s29  ;;  %21 = sbr.rel (!%p19_p10) target bundleno = 6 (0x6), region = 89 }
 0x333   :  { %466 = vsyncpa [#allocation3], 1 }
 0x334   :  { %468 = vsyncpa [#allocation3 + $0x1], 1 }
 0x335   :  { %469 = vsyncpa [#allocation6], 1 }
 0x336   :  { %470 = vsyncpa [#allocation4], 1 }
 0x337   :  { %472 = vsyncpa [#allocation4 + $0x1], 1 }

</bundles_post_ra>
